<compile_context>
chip_gen: v6e
topology: v6e:2x2x1
jax: 0.10.0
libtpu: 0.0.40
codegen_flags: <defaults>
</compile_context>

<pallas_src>
import functools

import jax
import jax.numpy as jnp
from jax import lax
from jax.experimental import pallas as pl
from jax.experimental.pallas import tpu as pltpu


def _sigmoid(x):
    # Single-EUP-pass sigmoid: 0.5*(tanh(x/2)+1) == 1/(1+exp(-x)).
    return 0.5 * (jnp.tanh(0.5 * x) + 1.0)


def _mod_half_kernel(m_ref, feat_ref, out_ref):
    """Aliased path: only the modulated half of the channels flows through.

    m_ref    : (1, c_half, 1)     per-batch Linear output
    feat_ref : (1, c_half, TILE)  modulated channels, lane-dense spatial tile
    out_ref  : (1, c_half, TILE)  same region of the (feature-aliased) output
    """
    f = feat_ref[...]
    att = _sigmoid(f * m_ref[...])
    out_ref[...] = (att * f).astype(out_ref.dtype)


def _mod_full_kernel(c_half, m_ref, feat_ref, out_ref):
    """Non-aliased path: all C channels, one unmasked full-block store.

    m_ref    : (1, C, 1)      Linear output zero-padded to C channels
    feat_ref : (1, C, TILE)
    out_ref  : (1, C, TILE)
    """
    f = feat_ref[...]
    att = _sigmoid(f * m_ref[...])
    ch = lax.broadcasted_iota(jnp.int32, f.shape, 1)   # channel index
    out_ref[...] = jnp.where(ch < c_half, att * f, f).astype(out_ref.dtype)


def _vmem_budget():
    """(vmem_limit_bytes, per-block target bytes), sized per TPU generation."""
    try:
        cap = pltpu.get_tpu_info().vmem_capacity_bytes
    except Exception:
        cap = 64 * 1024 * 1024          # unknown: assume v7x-like (smallest)
    if cap >= 128 * 1024 * 1024:        # v5e / v6e: 128 MiB physical VMEM
        return 64 * 1024 * 1024, 8 * 1024 * 1024
    return 32 * 1024 * 1024, 4 * 1024 * 1024   # v7x-safe default


def _pick_spatial_tile(hw, c_block, itemsize, target_bytes, min_tiles=1):
    """Largest multiple-of-128 divisor of `hw` keeping a (c_block, tile) block
    under ~target_bytes and hw/tile >= min_tiles.  `hw` must be a multiple of
    128 (the wrapper pads)."""
    assert hw % 128 == 0
    max_elems = max(128, target_bytes // max(1, c_block * itemsize))
    cap = hw // min_tiles if hw >= min_tiles * 128 else hw
    tile, t = 128, 256
    while t <= hw:
        if hw % t == 0 and t <= max_elems and t <= cap:
            tile = t
        t += 128
    return tile


def half_exposure_interactive_modulation(feature, modulation_vector, weight, bias,
                                         *, assume_donated=False):
    """
    feature:            [B, C, H, W]
    modulation_vector:  [B, V]
    weight:             [C//2, V]   (PyTorch nn.Linear layout)
    bias:               [C//2]
    assume_donated:     set True only when the caller donates `feature`
                        (e.g. jit donate_argnums); enables the in-place
                        half-channel kernel that skips DMA of the identity
                        half.  Default False uses a non-aliased full-channel
                        kernel (2x traffic, safe for non-donating callers).
    """
    B, C, H, W = feature.shape
    c_half = C // 2
    HW = H * W
    dtype = feature.dtype
    itemsize = jnp.dtype(dtype).itemsize

    # Hoisted Linear: m = vec @ W.T + b -> (B, c_half), once in XLA (MXU).
    m = (modulation_vector.astype(jnp.float32) @ weight.astype(jnp.float32).T
         + bias.astype(jnp.float32))
    m3 = m.astype(dtype)[:, :, None]                         # (B, c_half, 1)

    # Lane-dense flattened spatial axis, padded to a multiple of 128 lanes.
    feat_flat = feature.reshape(B, C, HW)
    HW_pad = ((HW + 127) // 128) * 128
    needs_pad = HW_pad != HW
    if needs_pad:
        feat_flat = jnp.pad(feat_flat, ((0, 0), (0, 0), (0, HW_pad - HW)))

    vmem_limit, target_bytes = _vmem_budget()
    aligned = (c_half % 8 == 0) and c_half > 0
    # Aliased half-channel kernel only when aliasing is free: either the
    # caller donates `feature`, or padding already produced a throwaway copy.
    use_alias = aligned and (assume_donated or needs_pad)

    c_block = c_half if use_alias else C
    min_tiles = 2 if B < 2 else 1                  # keep both v7x TCs busy
    tile = _pick_spatial_tile(HW_pad, c_block, itemsize, target_bytes, min_tiles)
    n_t = HW_pad // tile

    compiler_params = pltpu.CompilerParams(
        dimension_semantics=("parallel", "parallel"),
        vmem_limit_bytes=vmem_limit,
    )

    if use_alias:
        out_flat = pl.pallas_call(
            _mod_half_kernel,
            out_shape=jax.ShapeDtypeStruct((B, C, HW_pad), dtype),
            grid_spec=pltpu.PrefetchScalarGridSpec(
                num_scalar_prefetch=0,
                grid=(B, n_t),                     # spatial axis innermost
                in_specs=[
                    pl.BlockSpec((1, c_half, 1), lambda b, t: (b, 0, 0)),
                    pl.BlockSpec((1, c_half, tile), lambda b, t: (b, 0, t)),
                ],
                out_specs=pl.BlockSpec((1, c_half, tile), lambda b, t: (b, 0, t)),
            ),
            input_output_aliases={1: 0},           # feature -> output (in place)
            compiler_params=compiler_params,
        )(m3, feat_flat)
    else:
        m_full = jnp.pad(m3, ((0, 0), (0, C - c_half), (0, 0)))   # (B, C, 1)
        out_flat = pl.pallas_call(
            functools.partial(_mod_full_kernel, c_half),
            out_shape=jax.ShapeDtypeStruct((B, C, HW_pad), dtype),
            grid_spec=pltpu.PrefetchScalarGridSpec(
                num_scalar_prefetch=0,
                grid=(B, n_t),
                in_specs=[
                    pl.BlockSpec((1, C, 1), lambda b, t: (b, 0, 0)),
                    pl.BlockSpec((1, C, tile), lambda b, t: (b, 0, t)),
                ],
                out_specs=pl.BlockSpec((1, C, tile), lambda b, t: (b, 0, t)),
            ),
            compiler_params=compiler_params,
        )(m_full, feat_flat)

    if needs_pad:
        out_flat = out_flat[:, :, :HW]
    return out_flat.reshape(B, C, H, W)


def _reference(feature, modulation_vector, weight, bias):
    c_half = feature.shape[1] // 2
    m = modulation_vector @ weight.T + bias                 # (B, C//2)
    fm = feature[:, :c_half]
    fi = feature[:, c_half:]
    att = jax.nn.sigmoid(fm * m[:, :, None, None])
    return jnp.concatenate([att * fm, fi], axis=1)


if __name__ == "__main__":
    import warnings
    warnings.filterwarnings("ignore", message="Some donated buffers were not usable")

    key = jax.random.PRNGKey(0)
    k1, k2, k3, k4, k5, k6, k7, k8 = jax.random.split(key, 8)

    # ---- 1) Main path: C=32 -> c_half=16, HW=256 (lane-aligned) ----
    B, C, H, W, V = 2, 32, 16, 16, 8
    feature = jax.random.normal(k1, (B, C, H, W), dtype=jnp.float32)
    modulation_vector = jax.random.normal(k2, (B, V), dtype=jnp.float32)
    weight = jax.random.normal(k3, (C // 2, V), dtype=jnp.float32) * 0.1
    bias = jax.random.normal(k4, (C // 2,), dtype=jnp.float32) * 0.1

    ref = jax.block_until_ready(_reference(feature, modulation_vector, weight, bias))

    # 1a) default non-aliased full-channel kernel (no donation required)
    out = jax.block_until_ready(
        jax.jit(half_exposure_interactive_modulation)(
            feature, modulation_vector, weight, bias))
    assert out.shape == (B, C, H, W)
    assert jnp.allclose(out, ref, atol=1e-5, rtol=1e-5)

    # 1b) aliased half-channel kernel with donated feature buffer
    fn_alias = jax.jit(
        functools.partial(half_exposure_interactive_modulation, assume_donated=True),
        donate_argnums=(0,))
    out_a = jax.block_until_ready(fn_alias(feature, modulation_vector, weight, bias))
    assert out_a.shape == (B, C, H, W)
    assert jnp.allclose(out_a, ref, atol=1e-5, rtol=1e-5)

    # ---- 2) Unaligned channel count: C=8 -> c_half=4 (masked full path) ----
    B2, C2, H2, W2, V2 = 2, 8, 16, 16, 8
    feature2 = jax.random.normal(k5, (B2, C2, H2, W2), dtype=jnp.float32)
    mv2 = jax.random.normal(k6, (B2, V2), dtype=jnp.float32)
    weight2 = jax.random.normal(k3, (C2 // 2, V2), dtype=jnp.float32) * 0.1
    bias2 = jax.random.normal(k4, (C2 // 2,), dtype=jnp.float32) * 0.1

    ref2 = _reference(feature2, mv2, weight2, bias2)
    out2 = jax.block_until_ready(
        jax.jit(half_exposure_interactive_modulation)(feature2, mv2, weight2, bias2))
    assert out2.shape == (B2, C2, H2, W2)
    assert jnp.allclose(out2, ref2, atol=1e-5, rtol=1e-5)

    # ---- 3) Spatial padding path: HW = 20*13 = 260 (not a multiple of 128) ----
    B3, C3, H3, W3, V3 = 1, 32, 20, 13, 8
    feature3 = jax.random.normal(k7, (B3, C3, H3, W3), dtype=jnp.float32)
    mv3 = jax.random.normal(k8, (B3, V3), dtype=jnp.float32)
    weight3 = jax.random.normal(k3, (C3 // 2, V3), dtype=jnp.float32) * 0.1
    bias3 = jax.random.normal(k4, (C3 // 2,), dtype=jnp.float32) * 0.1

    ref3 = _reference(feature3, mv3, weight3, bias3)
    out3 = jax.block_until_ready(
        jax.jit(half_exposure_interactive_modulation)(feature3, mv3, weight3, bias3))
    assert out3.shape == (B3, C3, H3, W3)
    assert jnp.allclose(out3, ref3, atol=1e-5, rtol=1e-5)

    print("KERNEL_OK")
</pallas_src>

<mosaic_0001>
module attributes {stable_mosaic.version = 11 : i64} {
  func.func @_mod_full_kernel(%arg0: i32, %arg1: i32, %arg2: memref<1x32x1xf32, #tpu.memory_space<vmem>>, %arg3: memref<1x32x256xf32, #tpu.memory_space<vmem>>, %arg4: memref<1x32x256xf32, #tpu.memory_space<vmem>>) attributes {dimension_semantics = [#tpu.dimension_semantics<parallel>, #tpu.dimension_semantics<parallel>], iteration_bounds = array<i64: 2, 1>, scalar_prefetch = 0 : i64, scratch_operands = 0 : i64, tpu.core_type = #tpu.core_type<tc>, window_params = [{transform_indices = @transform_0, window_bounds = array<i64: 1, 32, 1>}, {transform_indices = @transform_1, window_bounds = array<i64: 1, 32, 256>}, {transform_indices = @transform_2, window_bounds = array<i64: 1, 32, 256>}]} {
    %c0 = arith.constant 0 : index
    %c0_0 = arith.constant 0 : index
    %c0_1 = arith.constant 0 : index
    %0 = vector.load %arg3[%c0, %c0_0, %c0_1] : memref<1x32x256xf32, #tpu.memory_space<vmem>>, vector<1x32x256xf32>
    %c0_2 = arith.constant 0 : index
    %c0_3 = arith.constant 0 : index
    %c0_4 = arith.constant 0 : index
    %1 = vector.load %arg2[%c0_2, %c0_3, %c0_4] : memref<1x32x1xf32, #tpu.memory_space<vmem>>, vector<1x32x1xf32>
    %2 = vector.broadcast %1 : vector<1x32x1xf32> to vector<1x32x256xf32>
    %3 = arith.mulf %0, %2 : vector<1x32x256xf32>
    %cst = arith.constant 5.000000e-01 : f32
    %4 = vector.broadcast %cst : f32 to vector<1x32x256xf32>
    %5 = arith.mulf %4, %3 : vector<1x32x256xf32>
    %6 = math.tanh %5 : vector<1x32x256xf32>
    %cst_5 = arith.constant 1.000000e+00 : f32
    %7 = vector.broadcast %cst_5 : f32 to vector<1x32x256xf32>
    %8 = arith.addf %6, %7 : vector<1x32x256xf32>
    %cst_6 = arith.constant 5.000000e-01 : f32
    %9 = vector.broadcast %cst_6 : f32 to vector<1x32x256xf32>
    %10 = arith.mulf %9, %8 : vector<1x32x256xf32>
    %11 = tpu.iota {dimensions = array<i32: 1>} : vector<1x32x256xi32>
    %c16_i32 = arith.constant 16 : i32
    %12 = vector.broadcast %c16_i32 : i32 to vector<1x32x256xi32>
    %13 = arith.cmpi slt, %11, %12 : vector<1x32x256xi32>
    %14 = arith.mulf %10, %0 : vector<1x32x256xf32>
    %15 = arith.select %13, %14, %0 : vector<1x32x256xi1>, vector<1x32x256xf32>
    %c0_7 = arith.constant 0 : index
    %c0_8 = arith.constant 0 : index
    %c0_9 = arith.constant 0 : index
    %16 = vector.load %arg4[%c0_7, %c0_8, %c0_9] : memref<1x32x256xf32, #tpu.memory_space<vmem>>, vector<1x32x256xf32>
    tpu.vector_store %arg4[%c0_7, %c0_8, %c0_9], %15 {strides = array<i32>} : memref<1x32x256xf32, #tpu.memory_space<vmem>>, vector<1x32x256xf32>,
    return
  }
  func.func @transform_0(%arg0: i32, %arg1: i32) -> (i32, i32, i32) {
    %c0_i32 = arith.constant 0 : i32
    %c0_i32_0 = arith.constant 0 : i32
    %c0_i32_1 = arith.constant 0 : i32
    return %arg0, %c0_i32, %c0_i32_0 : i32, i32, i32
  }
  func.func @transform_1(%arg0: i32, %arg1: i32) -> (i32, i32, i32) {
    %c0_i32 = arith.constant 0 : i32
    %c0_i32_0 = arith.constant 0 : i32
    return %arg0, %c0_i32, %arg1 : i32, i32, i32
  }
  func.func @transform_2(%arg0: i32, %arg1: i32) -> (i32, i32, i32) {
    %c0_i32 = arith.constant 0 : i32
    %c0_i32_0 = arith.constant 0 : i32
    return %arg0, %c0_i32, %arg1 : i32, i32, i32
  }
}

</mosaic_0001>

<bundles_post_ra>
// kernel: half_exposure_interactive_modulation.1
= control target key start
LH: loop header
LB: loop body
LE: loop exit
PB: predicated region body
PF: predicated region fallthrough
CT: control target
= control target key end

     0   :  { %s497_s9 = smov 0   ;;  %s499_s10 = smov 0   ;;  %s543_s0 = inlined_call_operand.vmem [shape: f32[2,32,1], index: 0, kind: input, shape index: {}]   ;;  %s544_s1 = inlined_call_operand.vmem [shape: f32[2,32,256], index: 1, kind: input, shape index: {}]   ;;  %s545_s2 = inlined_call_operand.vmem [shape: f32[2,32,256], index: 2, kind: output, shape index: {}]  }
   0x1   :  { %s501_s11 = smov 0  }
   0x2 LB: > { %s24_s12 = sadd.s32 1, %s475_s10  ;;  %p411_p0 = scmp.ge.s32.totalorder %s479_s11, 1  ;;  %s479_s11 = sphi %s501_s11, %s12_s11   ;;  %s475_s10 = sphi %s499_s10, %s547_s10   ;;  %s471_s9 = sphi %s497_s9, %s546_s9  }
   0x3   : > { %p26_p1 = scmp.ge.s32.totalorder %s24_s12, 2  ;;  %p143_p2 = scmp.lt.s32.totalorder %s479_s11, 3 }
   0x5   : > { %s549_s12 = smov (%p26_p1, %s24_s12), 0  ;;  %p144_p3 = pnand %p411_p0, %p143_p2 }
   0x6   : > { %p178_p4 = scmp.lt.s32.totalorder (!%p144_p3), %s471_s9, 1 }
   0x7   : > { %147 = sbr.rel (%p144_p3) target bundleno = 171 (0xab), region = 28 }
   0xc   : > { %v481_v0 = vmov 0   ;;  %s551_s9 = smov (!%p178_p4, %s471_s9), 1 }
   0xd   : > { %448 = vset.pattern.permute.xlu0 %v481_v0  ;;  %s420_s13 = sshll.u32 %s551_s9, 5  ;;  %s421_s14 = sshll.u32 %s551_s9, 6 }
   0xe   : > { %s182_s17 = scalar_lea.vmem %s543_s0, %s420_s13  ;;  %s191_s20 = scalar_lea.vmem %s544_s1, %s421_s14 }
   0xf   : > { %s524_s23 = scalar_lea.vmem %s545_s2, %s421_s14  ;;  %v207_v1 = vld [vmem:[%s191_s20 + $0x20] sm:$0xff]  ;;  %v208_v2 = vld [vmem:[%s191_s20 + $0x28] sm:$0xff]  ;;  %v209_v3 = vld [vmem:[%s191_s20 + $0x30] sm:$0xff] }
  0x10   : > { %v210_v4 = vld [vmem:[%s191_s20 + $0x38] sm:$0xff]  ;;  %v211_v5 = vld [vmem:[%s182_s17] sm:$0xff]  ;;  %304 = vst [vmem:[%s524_s23 + $0x20] sm:$0xff] %v207_v1  ;;  %305 = vst [vmem:[%s524_s23 + $0x28] sm:$0xff] %v208_v2 }
  0x11   : > { %306 = vst [vmem:[%s524_s23 + $0x30] sm:$0xff] %v209_v3  ;;  %307 = vst [vmem:[%s524_s23 + $0x38] sm:$0xff] %v210_v4  ;;  %217 = vperm.xlu0 %448, %v211_v5   ;;  %v212_v6 = vld [vmem:[%s182_s17 + $0x8] sm:$0xff]  ;;  %v203_v7 = vld [vmem:[%s191_s20] sm:$0xff] }
  0x12   : > { %v204_v8 = vld [vmem:[%s191_s20 + $0x8] sm:$0xff]  ;;  %v205_v12 = vld [vmem:[%s191_s20 + $0x10] sm:$0xff]  ;;  %v206_v13 = vld [vmem:[%s191_s20 + $0x18] sm:$0xff] }
  0x15   : > { %222 = vperm.xlu0 %448, %v212_v6  }
  0x8c   : > { %v218_v9 = vpop.permute.xlu0 %217 }
  0x8d   : > { %v235_v10 = vmul.f32 %v218_v9, %v203_v7  ;;  %v236_v11 = vmul.f32 %v218_v9, %v204_v8 }
  0x8f   : > { %v243_v14 = vmul.f32 0.5, %v235_v10  ;;  %v244_v15 = vmul.f32 0.5, %v236_v11 }
  0x90   : > { %v223_v16 = vpop.permute.xlu0 %222 }
  0x91   : > { %449 = vtanh.f32 %v243_v14  ;;  %v237_v17 = vmul.f32 %v223_v16, %v205_v12  ;;  %v238_v18 = vmul.f32 %v223_v16, %v206_v13 }
  0x92   : > { %451 = vtanh.f32 %v244_v15 }
  0x93   : > { %v245_v19 = vmul.f32 0.5, %v237_v17  ;;  %v246_v20 = vmul.f32 0.5, %v238_v18 }
  0x95   : > { %453 = vtanh.f32 %v245_v19 }
  0x96   : > { %455 = vtanh.f32 %v246_v20 }
  0x9e   : > { %v450_v21 = vpop.eup %449 }
  0x9f   : > { %v452_v22 = vpop.eup %451  ;;  %v259_v23 = vadd.f32 1.0, %v450_v21 }
  0xa0   : > { %v260_v24 = vadd.f32 1.0, %v452_v22 }
  0xa1   : > { %v267_v25 = vmul.f32 0.5, %v259_v23 }
  0xa2   : > { %v454_v26 = vpop.eup %453  ;;  %v268_v27 = vmul.f32 0.5, %v260_v24 }
  0xa3   : > { %v456_v28 = vpop.eup %455  ;;  %v284_v29 = vmul.f32 %v267_v25, %v203_v7  ;;  %v261_v30 = vadd.f32 1.0, %v454_v26 }
  0xa4   : > { %v285_v31 = vmul.f32 %v268_v27, %v204_v8  ;;  %v262_v32 = vadd.f32 1.0, %v456_v28 }
  0xa5   : > { %300 = vst [vmem:[%s524_s23] sm:$0xff] %v284_v29  ;;  %v269_v33 = vmul.f32 0.5, %v261_v30 }
  0xa6   : > { %301 = vst [vmem:[%s524_s23 + $0x8] sm:$0xff] %v285_v31  ;;  %v270_v34 = vmul.f32 0.5, %v262_v32 }
  0xa7   : > { %v286_v35 = vmul.f32 %v269_v33, %v205_v12 }
  0xa8   : > { %v287_v36 = vmul.f32 %v270_v34, %v206_v13 }
  0xa9   : > { %302 = vst [vmem:[%s524_s23 + $0x10] sm:$0xff] %v286_v35 }
  0xaa   : > { %303 = vst [vmem:[%s524_s23 + $0x18] sm:$0xff] %v287_v36 }
  0xab PF: > { %s12_s11 = sadd.s32 1, %s479_s11   ;;  %s546_s9 = smov %s475_s10 }
  0xac   : > { %p9_p5 = scmp.ge.s32.totalorder %s12_s11, 4   ;;  %s547_s10 = smov %s549_s12 }
  0xae   :  { %11 = sbr.rel (!%p9_p5) target bundleno = 2 (0x2), region = 61 }

</bundles_post_ra>
